<compile_context>
chip_gen: v7x
topology: tpu7x:2x2x1
jax: 0.10.0
libtpu: 0.0.40
codegen_flags: <defaults>
</compile_context>

<pallas_src>
import functools

import jax
import jax.numpy as jnp
from jax import lax
from jax.experimental import pallas as pl
from jax.experimental.pallas import tpu as pltpu


def _layernorm(x, w, b, eps=1e-5):
    # PyTorch nn.LayerNorm over the last dim (biased variance), f32 math.
    mu = jnp.mean(x, axis=-1, keepdims=True)
    xc = x - mu
    var = jnp.mean(xc * xc, axis=-1, keepdims=True)
    return xc * lax.rsqrt(var + eps) * w + b


# --------------------------- patch embed kernel ---------------------------
def embed_kernel(L, x_ref, w_ref, b_ref, pos_ref, out_ref):
    M, _ = x_ref.shape
    TB = M // L
    C = w_ref.shape[1]
    emb = jnp.dot(x_ref[...].astype(jnp.bfloat16), w_ref[...],
                  preferred_element_type=jnp.float32)              # (M, C) f32
    emb = emb + b_ref[...]                                         # (1, C) bias
    emb = emb.reshape(TB, L, C) + pos_ref[...][None]               # + pos (L, C)
    out_ref[...] = emb.reshape(M, C)


# ------------------------- transformer blocks kernel -----------------------
def vit_block_kernel(L, num_heads,
                     x0_ref,
                     ln1_w_ref, ln1_b_ref, wqkv_ref, wo_ref, wo_b_ref,
                     ln2_w_ref, ln2_b_ref, fc1_w_ref, fc1_b_ref,
                     fc2_w_ref, fc2_b_ref, ln3_w_ref, ln3_b_ref,
                     out_ref):
    d = pl.program_id(1)
    M, C = out_ref.shape          # M = tb * L
    TB = M // L
    H = num_heads
    hd = C // H
    scale = hd ** -0.5
    cdt = jnp.bfloat16            # MXU-native matmul input dtype; accumulate f32

    # Residual lives in out_ref (block index constant along the depth axis).
    @pl.when(d == 0)
    def _init():
        out_ref[...] = x0_ref[...]

    x = out_ref[...]                                               # (M, C) f32

    # ---------------- Attention (pre-norm) ----------------
    h = _layernorm(x, ln1_w_ref[0], ln1_b_ref[0]).astype(cdt)
    # Fused full-width qkv projection: one (M, C) x (C, 3C) MXU pass.
    qkv = jnp.dot(h, wqkv_ref[0],
                  preferred_element_type=jnp.float32).astype(cdt)  # (M, 3C)

    # Attention core per head on static lane slices of the fused qkv slab.
    o_heads = []
    for i in range(H):
        q = qkv[:, i * hd:(i + 1) * hd].reshape(TB, L, hd)
        k = qkv[:, C + i * hd:C + (i + 1) * hd].reshape(TB, L, hd)
        v = qkv[:, 2 * C + i * hd:2 * C + (i + 1) * hd].reshape(TB, L, hd)
        s = jnp.einsum('bqd,bkd->bqk', q, k,
                       preferred_element_type=jnp.float32) * scale  # (TB, L, L)
        s = s - jnp.max(s, axis=-1, keepdims=True)
        p = jnp.exp(s)
        p = p * pl.reciprocal(jnp.sum(p, axis=-1, keepdims=True), approx=True)
        o = jnp.einsum('bqk,bkd->bqd', p.astype(cdt), v,
                       preferred_element_type=jnp.float32)           # (TB, L, hd)
        o_heads.append(o.reshape(M, hd))
    # Heads packed back along the lane axis -> one full-K output projection.
    o_all = jnp.concatenate(o_heads, axis=-1).astype(cdt)            # (M, C)
    att = jnp.dot(o_all, wo_ref[0],
                  preferred_element_type=jnp.float32) + wo_b_ref[0]
    x = x + att

    # ---------------- MLP (pre-norm, ReLU) ----------------
    h2 = _layernorm(x, ln2_w_ref[0], ln2_b_ref[0]).astype(cdt)
    h2 = jnp.dot(h2, fc1_w_ref[0],
                 preferred_element_type=jnp.float32) + fc1_b_ref[0]
    h2 = jnp.maximum(h2, 0.0)                                        # ReLU
    h2 = jnp.dot(h2.astype(cdt), fc2_w_ref[0],
                 preferred_element_type=jnp.float32) + fc2_b_ref[0]
    x = x + h2

    # ---------------- per-block norm3 (matches reference Block) ----------------
    out_ref[...] = _layernorm(x, ln3_w_ref[0], ln3_b_ref[0])


# --------------------------------- wrapper ---------------------------------
def _vmem_limit_bytes():
    try:
        cap = int(pltpu.get_tpu_info().vmem_capacity_bytes)
    except Exception:
        cap = 64 * 1024 * 1024        # conservative fallback (safe on v7x)
    return min(int(cap * 0.85), 110 * 1024 * 1024)


def vit_forward(x, keep_mask, params, *, num_heads, depth, tb=None):
    B, L, Cin = x.shape
    C = params["pe_w"].shape[1]
    mlp_hidden = params["fc1_w"].shape[-1]
    H = num_heads
    hd = C // H

    if tb is None:
        # keep nb >= 2 so both v7x TensorCores get a parallel grid step
        tb = B // 2 if (B % 2 == 0 and B >= 2) else B
    assert B % tb == 0, "batch must be divisible by the per-step sample block"
    nb = B // tb
    assert (tb * L) % 8 == 0, "sublane dim of the activation slab must be 8-aligned"

    vmem_limit = _vmem_limit_bytes()

    # masking_tokens with a zero mask_token == zero out dropped tokens; XLA
    # fuses this multiply into the HBM read. Flatten to a lane/sublane-dense slab.
    x_flat = (x * keep_mask).astype(jnp.float32).reshape(B * L, Cin)

    # ---- patch embed (+ pos_embed), its own pallas_call ----
    emb = pl.pallas_call(
        functools.partial(embed_kernel, L),
        out_shape=jax.ShapeDtypeStruct((B * L, C), jnp.float32),
        grid_spec=pltpu.PrefetchScalarGridSpec(
            num_scalar_prefetch=0,
            grid=(nb,),
            in_specs=[pl.BlockSpec((tb * L, Cin), lambda b: (b, 0)),
                      pl.BlockSpec(params["pe_w"].shape, lambda b: (0, 0)),
                      pl.BlockSpec(params["pe_b"].shape, lambda b: (0, 0)),
                      pl.BlockSpec(params["pos"].shape, lambda b: (0, 0))],
            out_specs=pl.BlockSpec((tb * L, C), lambda b: (b, 0))),
        compiler_params=pltpu.CompilerParams(
            dimension_semantics=("parallel",),
            vmem_limit_bytes=vmem_limit),
        cost_estimate=pl.CostEstimate(
            flops=int(2 * B * L * Cin * C),
            transcendentals=0,
            bytes_accessed=int(4 * B * L * (Cin + C) + 2 * Cin * C)),
    )(x_flat, params["pe_w"], params["pe_b"], params["pos"])

    # ---- transformer blocks: grid = (batch blocks, depth) ----
    per_layer = ["ln1_w", "ln1_b", "wqkv", "wo", "wo_b",
                 "ln2_w", "ln2_b", "fc1_w", "fc1_b", "fc2_w", "fc2_b",
                 "ln3_w", "ln3_b"]

    def streamed(arr):            # per-layer weights: one depth slice at a time
        nd = arr.ndim
        return pl.BlockSpec((1,) + arr.shape[1:],
                            lambda b, d, _nd=nd: (d,) + (0,) * (_nd - 1))

    in_specs = [pl.BlockSpec((tb * L, C), lambda b, d: (b, 0))]
    in_specs += [streamed(params[k]) for k in per_layer]
    args = [emb] + [params[k] for k in per_layer]

    flops_block = (2 * B * L * C * 3 * C                # fused qkv
                   + 2 * 2 * B * H * L * L * hd         # QK^T + PV
                   + 2 * B * L * C * C                  # output projection
                   + 2 * 2 * B * L * C * mlp_hidden)    # fc1 + fc2
    weight_bytes = sum(int(params[k].size) * params[k].dtype.itemsize
                       for k in per_layer)
    ce = pl.CostEstimate(
        flops=int(depth * flops_block),
        transcendentals=int(depth * B * H * L * L),
        bytes_accessed=int(nb * weight_bytes + 2 * 4 * B * L * C))

    out = pl.pallas_call(
        functools.partial(vit_block_kernel, L, num_heads),
        out_shape=jax.ShapeDtypeStruct((B * L, C), jnp.float32),
        grid_spec=pltpu.PrefetchScalarGridSpec(
            num_scalar_prefetch=0,
            grid=(nb, depth),
            in_specs=in_specs,
            out_specs=pl.BlockSpec((tb * L, C), lambda b, d: (b, 0))),
        compiler_params=pltpu.CompilerParams(
            dimension_semantics=("parallel", "arbitrary"),
            vmem_limit_bytes=vmem_limit),
        cost_estimate=ce,
    )(*args)
    return out.reshape(B, L, C)


def make_keep_mask(key, B, L, mask_ratio=0.15):
    """random_masking + masking_tokens with zero mask_token == per-token keep mask."""
    len_keep = int(L * (1 - mask_ratio))
    noise = jax.random.uniform(key, (B, L))
    ids_shuffle = jnp.argsort(noise, axis=1)
    ids_restore = jnp.argsort(ids_shuffle, axis=1)
    keep = (ids_restore < len_keep).astype(jnp.float32)
    return keep[:, :, None]                                           # (B, L, 1)


def init_params(key, Cin, C, L, depth, num_heads, mlp_hidden):
    assert C % num_heads == 0
    ks = jax.random.split(key, 7)
    f32, bf16 = jnp.float32, jnp.bfloat16

    def w(k, shape):              # matmul weights stored bf16 (MXU-native)
        return (jax.random.normal(k, shape, f32) * 0.02).astype(bf16)

    p = {}
    # Conv1d(in_chans, embed_dim, k=1) weight (C, Cin, 1) stored transposed (Cin, C)
    p["pe_w"] = w(ks[0], (Cin, C))
    p["pe_b"] = jax.random.normal(ks[1], (1, C), f32) * 0.02
    p["pos"] = jax.random.normal(ks[2], (L, C), f32) * 0.02           # trunc_normal-ish
    # Per-block stacked params.  wqkv is the standard nn.Linear(dim, 3*dim)
    # weight transposed: lanes ordered [q | k | v], heads packed consecutively
    # (head i of q at columns [i*hd, (i+1)*hd)).  wo is nn.Linear(dim, dim)^T.
    p["ln1_w"] = jnp.ones((depth, 1, C), f32)
    p["ln1_b"] = jnp.zeros((depth, 1, C), f32)
    p["wqkv"] = w(ks[3], (depth, C, 3 * C))
    p["wo"] = w(ks[4], (depth, C, C))
    p["wo_b"] = jnp.zeros((depth, 1, C), f32)
    p["ln2_w"] = jnp.ones((depth, 1, C), f32)
    p["ln2_b"] = jnp.zeros((depth, 1, C), f32)
    p["fc1_w"] = w(ks[5], (depth, C, mlp_hidden))
    p["fc1_b"] = jnp.zeros((depth, 1, mlp_hidden), f32)
    p["fc2_w"] = w(ks[6], (depth, mlp_hidden, C))
    p["fc2_b"] = jnp.zeros((depth, 1, C), f32)
    p["ln3_w"] = jnp.ones((depth, 1, C), f32)
    p["ln3_b"] = jnp.zeros((depth, 1, C), f32)
    return p


if __name__ == "__main__":
    # Small shapes consistent with the module:
    #   img_size = L = 16 (patch_size=1 => num_patches = L), in_chans = 8,
    #   embed_dim = 32, depth = 2, num_heads = 2, mlp_hidden_dim = 16.
    B, L, Cin = 16, 16, 8
    C, depth, num_heads, mlp_hidden = 32, 2, 2, 16
    TB = 8          # 8 samples/grid step -> 128-row matmul tiles, nb = 2 parallel steps

    key = jax.random.PRNGKey(0)
    kx, km, kp = jax.random.split(key, 3)

    x = jax.random.normal(kx, (B, L, Cin), jnp.float32)               # (B, seq, in_chans)
    keep_mask = make_keep_mask(km, B, L, mask_ratio=0.15)
    params = init_params(kp, Cin, C, L, depth, num_heads, mlp_hidden)

    out = vit_forward(x, keep_mask, params, num_heads=num_heads, depth=depth, tb=TB)
    out = jax.block_until_ready(out)
    assert out.shape == (B, L, C) and out.dtype == jnp.float32
    print("KERNEL_OK")
</pallas_src>

<mosaic_0001>
module attributes {stable_mosaic.version = 11 : i64} {
  func.func @embed_kernel(%arg0: i32, %arg1: memref<128x8xf32, #tpu.memory_space<vmem>>, %arg2: memref<8x32xbf16, #tpu.memory_space<vmem>>, %arg3: memref<1x32xf32, #tpu.memory_space<vmem>>, %arg4: memref<16x32xf32, #tpu.memory_space<vmem>>, %arg5: memref<128x32xf32, #tpu.memory_space<vmem>>) attributes {dimension_semantics = [#tpu.dimension_semantics<parallel>], iteration_bounds = array<i64: 2>, scalar_prefetch = 0 : i64, scratch_operands = 0 : i64, tpu.core_type = #tpu.core_type<tc>, window_params = [{transform_indices = @transform_0, window_bounds = array<i64: 128, 8>}, {pipeline_mode = #tpu.pipeline_mode<synchronous>, transform_indices = @transform_1, window_bounds = array<i64: 8, 32>}, {pipeline_mode = #tpu.pipeline_mode<synchronous>, transform_indices = @transform_2, window_bounds = array<i64: 1, 32>}, {pipeline_mode = #tpu.pipeline_mode<synchronous>, transform_indices = @transform_3, window_bounds = array<i64: 16, 32>}, {transform_indices = @transform_4, window_bounds = array<i64: 128, 32>}]} {
    %c0 = arith.constant 0 : index
    %c0_0 = arith.constant 0 : index
    %0 = vector.load %arg1[%c0, %c0_0] : memref<128x8xf32, #tpu.memory_space<vmem>>, vector<128x8xf32>
    %1 = arith.truncf %0 : vector<128x8xf32> to vector<128x8xbf16>
    %c0_1 = arith.constant 0 : index
    %c0_2 = arith.constant 0 : index
    %2 = vector.load %arg2[%c0_1, %c0_2] : memref<8x32xbf16, #tpu.memory_space<vmem>>, vector<8x32xbf16>
    %cst = arith.constant dense<0.000000e+00> : vector<128x32xf32>
    %3 = tpu.matmul %1, %2, %cst {dimension_numbers = #tpu.dot_dimension_numbers<[1], [0], [0], [1], [0, 0, 1, 1], [], []>} : vector<128x8xbf16>, vector<8x32xbf16>, vector<128x32xf32> -> vector<128x32xf32>
    %c0_3 = arith.constant 0 : index
    %c0_4 = arith.constant 0 : index
    %4 = vector.load %arg3[%c0_3, %c0_4] : memref<1x32xf32, #tpu.memory_space<vmem>>, vector<1x32xf32>
    %5 = vector.broadcast %4 : vector<1x32xf32> to vector<128x32xf32>
    %6 = arith.addf %3, %5 : vector<128x32xf32>
    %7 = vector.shape_cast %6 : vector<128x32xf32> to vector<8x16x32xf32>
    %c0_5 = arith.constant 0 : index
    %c0_6 = arith.constant 0 : index
    %8 = vector.load %arg4[%c0_5, %c0_6] : memref<16x32xf32, #tpu.memory_space<vmem>>, vector<16x32xf32>
    %9 = vector.shape_cast %8 : vector<16x32xf32> to vector<1x16x32xf32>
    %10 = vector.broadcast %9 : vector<1x16x32xf32> to vector<8x16x32xf32>
    %11 = arith.addf %7, %10 : vector<8x16x32xf32>
    %12 = vector.shape_cast %11 : vector<8x16x32xf32> to vector<128x32xf32>
    %c0_7 = arith.constant 0 : index
    %c0_8 = arith.constant 0 : index
    %13 = vector.load %arg5[%c0_7, %c0_8] : memref<128x32xf32, #tpu.memory_space<vmem>>, vector<128x32xf32>
    tpu.vector_store %arg5[%c0_7, %c0_8], %12 {strides = array<i32>} : memref<128x32xf32, #tpu.memory_space<vmem>>, vector<128x32xf32>,
    return
  }
  func.func @transform_0(%arg0: i32) -> (i32, i32) {
    %c0_i32 = arith.constant 0 : i32
    %c0_i32_0 = arith.constant 0 : i32
    return %arg0, %c0_i32 : i32, i32
  }
  func.func @transform_1(%arg0: i32) -> (i32, i32) {
    %c0_i32 = arith.constant 0 : i32
    %c0_i32_0 = arith.constant 0 : i32
    %c0_i32_1 = arith.constant 0 : i32
    return %c0_i32, %c0_i32_0 : i32, i32
  }
  func.func @transform_2(%arg0: i32) -> (i32, i32) {
    %c0_i32 = arith.constant 0 : i32
    %c0_i32_0 = arith.constant 0 : i32
    %c0_i32_1 = arith.constant 0 : i32
    return %c0_i32, %c0_i32_0 : i32, i32
  }
  func.func @transform_3(%arg0: i32) -> (i32, i32) {
    %c0_i32 = arith.constant 0 : i32
    %c0_i32_0 = arith.constant 0 : i32
    %c0_i32_1 = arith.constant 0 : i32
    return %c0_i32, %c0_i32_0 : i32, i32
  }
  func.func @transform_4(%arg0: i32) -> (i32, i32) {
    %c0_i32 = arith.constant 0 : i32
    %c0_i32_0 = arith.constant 0 : i32
    return %arg0, %c0_i32 : i32, i32
  }
}

</mosaic_0001>

<bundles_post_ra>
// kernel: tpu_custom_call.1
= control target key start
LH: loop header
LB: loop body
LE: loop exit
PB: predicated region body
PF: predicated region fallthrough
CT: control target
= control target key end

     0   :  { %s543_s15 = smov 0   ;;  %s621_s0 = inlined_call_operand.vmem [shape: f32[256,8], index: 0, kind: input, shape index: {}]   ;;  %s622_s1 = inlined_call_operand.vmem [shape: bf16[8,32], index: 1, kind: input, shape index: {}]   ;;  %s623_s2 = inlined_call_operand.vmem [shape: f32[1,32], index: 2, kind: input, shape index: {}]   ;;  %s624_s3 = inlined_call_operand.vmem [shape: f32[16,32], index: 3, kind: input, shape index: {}]   ;;  %s625_s4 = inlined_call_operand.vmem [shape: f32[256,32], index: 4, kind: output, shape index: {}]  }
   0x1 LB: > { %s451_s16 = sadd.s32 4294967295, %s516_s15   ;;  %p455_p0 = scmp.ge.s32.totalorder %s516_s15, 1  ;;  %s516_s15 = sphi %s543_s15, %s14_s15  }
   0x2   : > { %p163_p1 = scmp.lt.s32.totalorder %s516_s15, 3 }
   0x4   : > { %p164_p2 = pnand %p455_p0, %p163_p1 }
   0x5   : > { %v226_v0 = vld [vmem:[%s622_s1] sm:$0xf] (!%p164_p2)  ;;  %vm259_vm0 = vcmask (!%p164_p2), 1043456   ;;  %s456_s19 = sshll.u32 (!%p164_p2), %s451_s16, 4  ;;  %vm234_vm1 = vcmask (!%p164_p2), 64512   ;;  %vm378_vm2 = vcmask (!%p164_p2), 261120  }
   0x6   : > { %167 = sbr.rel (%p164_p2) target bundleno = 249 (0xf9), region = 36  ;;  %500 = vmatprep.subr.msk.bf16.mxu0 (!%p164_p2), %vm259_vm0, %v226_v0  ;;  %501 = vmatprep.subr.msk.bf16.mxu1 (!%p164_p2), %vm259_vm0, %v226_v0  ;;  %v261_v1 = vsel (!%p164_p2), %vm259_vm0, %v226_v0, 0  ;;  %p190_p3 = scmp.lt.s32.totalorder (!%p164_p2), %s456_s19, 31  ;;  %v460_v26 = vld [vmem:[%s623_s2] ss:$0 sm:$0xff] (!%p164_p2)  ;;  %v361_v36 = vld [vmem:[%s624_s3 + $0x8] sm:$0xff] (!%p164_p2) }
   0x7   : > { %481 = vmatpush3.bf16.msra.mxu0 (!%p164_p2), %v261_v1  ;;  %499 = vmatpush3.bf16.msra.mxu1 (!%p164_p2), %v261_v1  ;;  %v360_v28 = vld [vmem:[%s624_s3] sm:$0xff] (!%p164_p2) }
   0xd   : > { %s627_s19 = smov (!%p190_p3, %s456_s19), 31 }
   0xe   : > { %s457_s20 = sshll.u32 %s627_s19, 3 }
   0xf   : > { %s193_s23 = scalar_lea.vmem %s621_s0, %s457_s20  ;;  %s581_s30 = scalar_lea.vmem %s625_s4, %s457_s20 }
  0x10   : > { %v202_v2 = vld [vmem:[%s193_s23] sm:$0xff]  ;;  %v203_v3 = vld [vmem:[%s193_s23 + $0x8] sm:$0xff]  ;;  %v204_v7 = vld [vmem:[%s193_s23 + $0x10] sm:$0xff] }
  0x11   : > { %v210_v4 = vld [vmem:[%s193_s23 + $0x40] sm:$0xff]  ;;  %v218_v5 = vpack.c.bf16 %v203_v3, %v202_v2  ;;  %v211_v6 = vld [vmem:[%s193_s23 + $0x48] sm:$0xff]  ;;  %v205_v8 = vld [vmem:[%s193_s23 + $0x18] sm:$0xff] }
  0x12   : > { %v222_v9 = vpack.c.bf16 %v211_v6, %v210_v4  ;;  %v219_v10 = vpack.c.bf16 %v205_v8, %v204_v7  ;;  %v212_v11 = vld [vmem:[%s193_s23 + $0x50] sm:$0xff]  ;;  %v213_v12 = vld [vmem:[%s193_s23 + $0x58] sm:$0xff]  ;;  %v206_v13 = vld [vmem:[%s193_s23 + $0x20] sm:$0xff] }
  0x13   : > { %482 = vmatprep.mubr.msk.bf16.mxu0 %vm234_vm1, %v218_v5  ;;  %v223_v14 = vpack.c.bf16 %v213_v12, %v212_v11  ;;  %v207_v15 = vld [vmem:[%s193_s23 + $0x28] sm:$0xff]  ;;  %v214_v16 = vld [vmem:[%s193_s23 + $0x60] sm:$0xff]  ;;  %v208_v20 = vld [vmem:[%s193_s23 + $0x30] sm:$0xff] }
  0x14   : > { %v215_v17 = vld [vmem:[%s193_s23 + $0x68] sm:$0xff]  ;;  %490 = vmatprep.mubr.msk.bf16.mxu1 %vm234_vm1, %v222_v9  ;;  %483 = vmatmul.mubr.msk.bf16.vlgmr.msra.gmra.mrb[0].mxu0 %vm234_vm1, %v219_v10  ;;  %v220_v18 = vpack.c.bf16 %v207_v15, %v206_v13  ;;  %v209_v21 = vld [vmem:[%s193_s23 + $0x38] sm:$0xff]  ;;  %v216_v22 = vld [vmem:[%s193_s23 + $0x70] sm:$0xff] }
  0x15   : > { %v224_v19 = vpack.c.bf16 %v215_v17, %v214_v16  ;;  %491 = vmatmul.mubr.msk.bf16.vlgmr.msra.gmra.mrb[0].mxu1 %vm234_vm1, %v223_v14  ;;  %v217_v23 = vld [vmem:[%s193_s23 + $0x78] sm:$0xff]  ;;  %v221_v24 = vpack.c.bf16 %v209_v21, %v208_v20 }
  0x16   : > { %486 = vmatprep.mubr.msk.bf16.mxu0 %vm234_vm1, %v220_v18  ;;  %v225_v25 = vpack.c.bf16 %v217_v23, %v216_v22 }
  0x17   : > { %494 = vmatprep.mubr.msk.bf16.mxu1 %vm234_vm1, %v224_v19 }
  0x1c   : > { %487 = vmatmul.mubr.msk.bf16.gmra.mrb[4].mxu0 %vm234_vm1, %v221_v24 }
  0x1d   : > { %495 = vmatmul.mubr.msk.bf16.gmra.mrb[4].mxu1 %vm234_vm1, %v225_v25 }
  0xe7   : > { %v484_v27 = vpop.f32.mrb[0].mxu0 }
  0xe8   : > { %v306_v29 = vadd.f32 %v484_v27, %v460_v26  ;;  %v492_v30 = vpop.f32.mrb[0].mxu1  ;;  %v297_v31 = vpop.f32.mrb[1].mxu0 }
  0xe9   : > { %v338_v32 = vadd.f32 %v492_v30, %v460_v26  ;;  %v298_v33 = vadd.f32 %v460_v26, %v297_v31  ;;  %v329_v34 = vpop.f32.mrb[1].mxu1  ;;  %v485_v35 = vpop.f32.mrb[2].mxu0 }
  0xea   : > { %v364_v37 = vadd.f32 %v360_v28, %v306_v29  ;;  %v330_v38 = vadd.f32 %v460_v26, %v329_v34  ;;  %v309_v39 = vadd.f32 %v485_v35, %v460_v26  ;;  %v493_v40 = vpop.f32.mrb[2].mxu1  ;;  %v300_v41 = vpop.f32.mrb[3].mxu0 }
  0xeb   : > { %v372_v42 = vadd.f32 %v360_v28, %v338_v32  ;;  %v362_v43 = vadd.f32 %v360_v28, %v298_v33  ;;  %v341_v44 = vadd.f32 %v493_v40, %v460_v26  ;;  %v301_v45 = vadd.f32 %v460_v26, %v300_v41  ;;  %v332_v46 = vpop.f32.mrb[3].mxu1 }
  0xec   : > { %381 = vst.msk [vmem:[%s581_s30 + $0x10] sm:$0xff] %vm378_vm2, %v364_v37  ;;  %v370_v47 = vadd.f32 %v360_v28, %v330_v38  ;;  %v365_v48 = vadd.f32 %v361_v36, %v309_v39  ;;  %v333_v49 = vadd.f32 %v460_v26, %v332_v46 }
  0xed   : > { %389 = vst.msk [vmem:[%s581_s30 + $0x50] sm:$0xff] %vm378_vm2, %v372_v42  ;;  %379 = vst.msk [vmem:[%s581_s30] sm:$0xff] %vm378_vm2, %v362_v43  ;;  %v373_v50 = vadd.f32 %v361_v36, %v341_v44  ;;  %v363_v51 = vadd.f32 %v361_v36, %v301_v45 }
  0xee   : > { %387 = vst.msk [vmem:[%s581_s30 + $0x40] sm:$0xff] %vm378_vm2, %v370_v47  ;;  %382 = vst.msk [vmem:[%s581_s30 + $0x18] sm:$0xff] %vm378_vm2, %v365_v48  ;;  %v371_v52 = vadd.f32 %v361_v36, %v333_v49 }
  0xef   : > { %390 = vst.msk [vmem:[%s581_s30 + $0x58] sm:$0xff] %vm378_vm2, %v373_v50  ;;  %380 = vst.msk [vmem:[%s581_s30 + $0x8] sm:$0xff] %vm378_vm2, %v363_v51  ;;  %v488_v53 = vpop.f32.mrb[4].mxu0 }
  0xf0   : > { %388 = vst.msk [vmem:[%s581_s30 + $0x48] sm:$0xff] %vm378_vm2, %v371_v52  ;;  %v322_v54 = vadd.f32 %v488_v53, %v460_v26  ;;  %v496_v55 = vpop.f32.mrb[4].mxu1  ;;  %v313_v56 = vpop.f32.mrb[5].mxu0 }
  0xf1   : > { %v354_v57 = vadd.f32 %v496_v55, %v460_v26  ;;  %v314_v58 = vadd.f32 %v460_v26, %v313_v56  ;;  %v345_v59 = vpop.f32.mrb[5].mxu1  ;;  %v489_v60 = vpop.f32.mrb[6].mxu0 }
  0xf2   : > { %v368_v61 = vadd.f32 %v360_v28, %v322_v54  ;;  %v346_v62 = vadd.f32 %v460_v26, %v345_v59  ;;  %v325_v63 = vadd.f32 %v489_v60, %v460_v26  ;;  %v497_v0 = vpop.f32.mrb[6].mxu1  ;;  %v316_v1 = vpop.f32.mrb[7].mxu0 }
  0xf3   : > { %v376_v2 = vadd.f32 %v360_v28, %v354_v57  ;;  %v366_v3 = vadd.f32 %v360_v28, %v314_v58  ;;  %v357_v4 = vadd.f32 %v497_v0, %v460_v26  ;;  %v317_v5 = vadd.f32 %v460_v26, %v316_v1  ;;  %v348_v6 = vpop.f32.mrb[7].mxu1 }
  0xf4   : > { %385 = vst.msk [vmem:[%s581_s30 + $0x30] sm:$0xff] %vm378_vm2, %v368_v61  ;;  %v374_v7 = vadd.f32 %v360_v28, %v346_v62  ;;  %v369_v8 = vadd.f32 %v361_v36, %v325_v63  ;;  %v349_v9 = vadd.f32 %v460_v26, %v348_v6 }
  0xf5   : > { %393 = vst.msk [vmem:[%s581_s30 + $0x70] sm:$0xff] %vm378_vm2, %v376_v2  ;;  %383 = vst.msk [vmem:[%s581_s30 + $0x20] sm:$0xff] %vm378_vm2, %v366_v3  ;;  %v377_v10 = vadd.f32 %v361_v36, %v357_v4  ;;  %v367_v11 = vadd.f32 %v361_v36, %v317_v5 }
  0xf6   : > { %391 = vst.msk [vmem:[%s581_s30 + $0x60] sm:$0xff] %vm378_vm2, %v374_v7  ;;  %386 = vst.msk [vmem:[%s581_s30 + $0x38] sm:$0xff] %vm378_vm2, %v369_v8  ;;  %v375_v12 = vadd.f32 %v361_v36, %v349_v9 }
  0xf7   : > { %394 = vst.msk [vmem:[%s581_s30 + $0x78] sm:$0xff] %vm378_vm2, %v377_v10  ;;  %384 = vst.msk [vmem:[%s581_s30 + $0x28] sm:$0xff] %vm378_vm2, %v367_v11 }
  0xf8   : > { %392 = vst.msk [vmem:[%s581_s30 + $0x68] sm:$0xff] %vm378_vm2, %v375_v12 }
  0xf9 PF: > { %s14_s15 = sadd.s32 1, %s516_s15  }
  0xfa   : > { %p11_p4 = scmp.ge.s32.totalorder %s14_s15, 4  }
  0xfc   :  { %13 = sbr.rel (!%p11_p4) target bundleno = 1 (0x1), region = 66 }

</bundles_post_ra>
